<compile_context>
chip_gen: v6e
topology: v6e:2x2x1
jax: 0.10.0
libtpu: 0.0.40
codegen_flags: <defaults>
</compile_context>

<pallas_src>
import jax
import jax.numpy as jnp
from jax.experimental import pallas as pl
from jax.experimental.pallas import tpu as pltpu

_NEG = -1e30  # bias padding for unused class lanes: never wins max, exp -> 0


def _round_up(v, m):
    return ((v + m - 1) // m) * m


def _make_kernel(head_segments):
    """head_segments: static tuple of (lane_start, lane_size), 128-aligned."""

    def kernel(x_ref, w_ref, b_ref, o_ref, acc_ref):
        # x_ref: (tile_b, tile_k) bf16     w_ref: (tile_k, C_total) bf16
        # b_ref: (1, C_total)     f32      o_ref: (tile_b, C_total) f32
        # acc_ref: (tile_b, C_total) f32 scratch (persists across k)
        k = pl.program_id(1)

        @pl.when(k == 0)
        def _():
            acc_ref[...] = jnp.zeros_like(acc_ref)

        acc_ref[...] += jnp.dot(x_ref[...], w_ref[...],
                                preferred_element_type=jnp.float32)

        @pl.when(k == pl.num_programs(1) - 1)
        def _():
            logits = acc_ref[...] + b_ref[...]          # f32; pad lanes ~ -1e30
            for start, size in head_segments:           # static, lane-aligned
                seg = logits[:, start:start + size]
                m = jnp.max(seg, axis=-1, keepdims=True)
                e = jnp.exp(seg - m)                    # padded lanes -> 0
                s = jnp.sum(e, axis=-1, keepdims=True)
                o_ref[:, start:start + size] = seg - (jnp.log(s) + m)

    return kernel


def sdmd_linear_forward(x, weights, biases, *, tile_b=512):
    """JAX/Pallas equivalent of SDMDLinear.forward.

    x:       (B, ...) input; flattened from dim 1 (like torch.flatten(x, 1)).
    weights: list of (num_classes_i, size_input) arrays (nn.Linear layout).
    biases:  list of (num_classes_i,) arrays.
    Returns a tuple of (B, num_classes_i) arrays:
            log_softmax(x_flat @ W_i.T + b_i, axis=-1).
    """
    B = x.shape[0]
    x_flat = x.reshape(B, -1)
    D = x_flat.shape[1]
    nums_classes = [int(w.shape[0]) for w in weights]

    # --- fused, per-head lane-aligned class layout --------------------------
    c_pads = [_round_up(n, 128) for n in nums_classes]
    c_total = sum(c_pads)
    starts, off = [], 0
    for c in c_pads:
        starts.append(off)
        off += c
    head_segments = tuple(zip(starts, c_pads))

    # --- tiling --------------------------------------------------------------
    d128 = _round_up(D, 128)
    # Keep the (double-buffered, bf16) weight block around <= 8 MiB.
    max_k = max(128, ((8 << 20) // (2 * 2 * c_total)) // 128 * 128)
    tile_k = min(d128, 2048, max_k)
    num_k = -(-d128 // tile_k)
    tile_k = _round_up(-(-d128 // num_k), 128)          # rebalance K tiles
    d_pad = tile_k * num_k

    tile_b = min(tile_b, _round_up(B, 8))
    # Keep the per-step row-tile footprint (x in, out, acc) around <= 16 MiB.
    per_row = 2 * tile_k * 2 + 2 * c_total * 4 + c_total * 4
    while tile_b > 8 and tile_b * per_row > (16 << 20):
        tile_b = max(8, (tile_b // 2) // 8 * 8)
    b_pad = _round_up(B, tile_b)
    num_r = b_pad // tile_b

    # --- pack operands (params are per-model constants; under jit this folds
    #     away / can be hoisted out of the step fn) --------------------------
    x_bf = x_flat.astype(jnp.bfloat16)
    if b_pad != B or d_pad != D:                        # pad only when needed
        x_bf = jnp.pad(x_bf, ((0, b_pad - B), (0, d_pad - D)))

    w_cat = jnp.concatenate([
        jnp.pad(w.astype(jnp.bfloat16).T, ((0, d_pad - D), (0, c - n)))
        for w, n, c in zip(weights, nums_classes, c_pads)
    ], axis=1)                                          # (d_pad, c_total) bf16
    b_cat = jnp.concatenate([
        jnp.pad(b.astype(jnp.float32), (0, c - n), constant_values=_NEG)
        for b, n, c in zip(biases, nums_classes, c_pads)
    ])[None, :]                                         # (1, c_total) f32

    # --- VMEM budget + cost hint ---------------------------------------------
    vmem_bytes = (2 * tile_b * tile_k * 2               # x tile, double buffer
                  + 2 * tile_k * c_total * 2            # W block
                  + 2 * c_total * 4                     # bias
                  + 2 * tile_b * c_total * 4            # output block
                  + tile_b * c_total * 4)               # f32 accumulator
    vmem_limit = int(min(64 << 20, max(2 * vmem_bytes, 16 << 20)))

    cost = pl.CostEstimate(
        flops=2 * b_pad * d_pad * c_total + 5 * b_pad * c_total,
        transcendentals=2 * b_pad * c_total,
        bytes_accessed=(b_pad * d_pad * 2 + num_r * d_pad * c_total * 2
                        + c_total * 4 + b_pad * c_total * 4))

    out = pl.pallas_call(
        _make_kernel(head_segments),
        out_shape=jax.ShapeDtypeStruct((b_pad, c_total), jnp.float32),
        grid_spec=pltpu.PrefetchScalarGridSpec(
            num_scalar_prefetch=0,
            grid=(num_r, num_k),
            in_specs=[
                pl.BlockSpec((tile_b, tile_k), lambda r, k: (r, k)),   # x
                pl.BlockSpec((tile_k, c_total), lambda r, k: (k, 0)),  # W_cat
                pl.BlockSpec((1, c_total), lambda r, k: (0, 0)),       # bias
            ],
            out_specs=pl.BlockSpec((tile_b, c_total), lambda r, k: (r, 0)),
            scratch_shapes=[pltpu.VMEM((tile_b, c_total), jnp.float32)],
        ),
        compiler_params=pltpu.CompilerParams(
            dimension_semantics=("parallel", "arbitrary"),
            vmem_limit_bytes=vmem_limit),
        cost_estimate=cost,
    )(x_bf, w_cat, b_cat)

    # NOTE: padded class lanes of `out` hold garbage by construction; only the
    # sliced views below are valid (matches the tuple-of-heads API).
    return tuple(out[:B, s:s + n]
                 for (s, _), n in zip(head_segments, nums_classes))


if __name__ == "__main__":
    key = jax.random.PRNGKey(0)

    # Small shapes consistent with the module: NCHW input, two class heads.
    nums_classes = (5, 10)
    batch, channels, spatial = 2, 4, 16
    size_input = channels * spatial * spatial   # 1024 after flatten(x, 1)

    kx, kp = jax.random.split(key)
    x = jax.random.normal(kx, (batch, channels, spatial, spatial),
                          dtype=jnp.float32)

    pkeys = jax.random.split(kp, 2 * len(nums_classes))
    weights = [
        jax.random.normal(pkeys[2 * i], (n, size_input), dtype=jnp.float32)
        / (size_input ** 0.5)
        for i, n in enumerate(nums_classes)
    ]
    biases = [
        0.1 * jax.random.normal(pkeys[2 * i + 1], (n,), dtype=jnp.float32)
        for i, n in enumerate(nums_classes)
    ]

    outs = sdmd_linear_forward(x, weights, biases)
    outs = jax.block_until_ready(outs)

    # Reference: flatten -> Linear -> log_softmax(dim=-1) per head (f32).
    x_flat = x.reshape(batch, -1)
    ok = True
    for out, w, b in zip(outs, weights, biases):
        logits = jnp.dot(x_flat, w.T, precision=jax.lax.Precision.HIGHEST) + b
        ref = jax.nn.log_softmax(logits, axis=-1)
        ok &= out.shape == ref.shape
        # Tolerance covers explicit bf16 MXU operands vs f32 reference.
        ok &= bool(jnp.allclose(out, ref, atol=2e-2, rtol=2e-2))

    if ok:
        print("KERNEL_OK")
    else:
        raise SystemExit("mismatch vs reference")
</pallas_src>

<mosaic_0001>
module attributes {stable_mosaic.version = 11 : i64} {
  func.func @kernel(%arg0: i32, %arg1: i32, %arg2: memref<8x1024xbf16, #tpu.memory_space<vmem>>, %arg3: memref<1024x256xbf16, #tpu.memory_space<vmem>>, %arg4: memref<1x256xf32, #tpu.memory_space<vmem>>, %arg5: memref<8x256xf32, #tpu.memory_space<vmem>>, %arg6: memref<8x256xf32, #tpu.memory_space<vmem>>) attributes {dimension_semantics = [#tpu.dimension_semantics<parallel>, #tpu.dimension_semantics<arbitrary>], iteration_bounds = array<i64: 1, 1>, scalar_prefetch = 0 : i64, scratch_operands = 1 : i64, tpu.core_type = #tpu.core_type<tc>, window_params = [{transform_indices = @transform_0, window_bounds = array<i64: 8, 1024>}, {transform_indices = @transform_1, window_bounds = array<i64: 1024, 256>}, {pipeline_mode = #tpu.pipeline_mode<synchronous>, transform_indices = @transform_2, window_bounds = array<i64: 1, 256>}, {transform_indices = @transform_3, window_bounds = array<i64: 8, 256>}]} {
    %c0_i32 = arith.constant 0 : i32
    %0 = arith.cmpi eq, %arg1, %c0_i32 : i32
    %1 = arith.extui %0 : i1 to i32
    %c0_i32_0 = arith.constant 0 : i32
    %2 = arith.cmpi ne, %1, %c0_i32_0 : i32
    scf.if %2 {
      %cst_10 = arith.constant 0.000000e+00 : f32
      %12 = vector.broadcast %cst_10 : f32 to vector<8x256xf32>
      %c0_11 = arith.constant 0 : index
      %c0_12 = arith.constant 0 : index
      %13 = vector.load %arg6[%c0_11, %c0_12] : memref<8x256xf32, #tpu.memory_space<vmem>>, vector<8x256xf32>
      tpu.vector_store %arg6[%c0_11, %c0_12], %12 {strides = array<i32>} : memref<8x256xf32, #tpu.memory_space<vmem>>, vector<8x256xf32>,
    } else {
    }
    %c0 = arith.constant 0 : index
    %c0_1 = arith.constant 0 : index
    %3 = vector.load %arg6[%c0, %c0_1] : memref<8x256xf32, #tpu.memory_space<vmem>>, vector<8x256xf32>
    %c0_2 = arith.constant 0 : index
    %c0_3 = arith.constant 0 : index
    %4 = vector.load %arg2[%c0_2, %c0_3] : memref<8x1024xbf16, #tpu.memory_space<vmem>>, vector<8x1024xbf16>
    %c0_4 = arith.constant 0 : index
    %c0_5 = arith.constant 0 : index
    %5 = vector.load %arg3[%c0_4, %c0_5] : memref<1024x256xbf16, #tpu.memory_space<vmem>>, vector<1024x256xbf16>
    %cst = arith.constant dense<0.000000e+00> : vector<8x256xf32>
    %6 = tpu.matmul %4, %5, %cst {dimension_numbers = #tpu.dot_dimension_numbers<[1], [0], [0], [1], [0, 0, 1, 1], [], []>} : vector<8x1024xbf16>, vector<1024x256xbf16>, vector<8x256xf32> -> vector<8x256xf32>
    %7 = arith.addf %3, %6 : vector<8x256xf32>
    %c0_6 = arith.constant 0 : index
    %c0_7 = arith.constant 0 : index
    %8 = vector.load %arg6[%c0_6, %c0_7] : memref<8x256xf32, #tpu.memory_space<vmem>>, vector<8x256xf32>
    tpu.vector_store %arg6[%c0_6, %c0_7], %7 {strides = array<i32>} : memref<8x256xf32, #tpu.memory_space<vmem>>, vector<8x256xf32>,
    %c0_i32_8 = arith.constant 0 : i32
    %9 = arith.cmpi eq, %arg1, %c0_i32_8 : i32
    %10 = arith.extui %9 : i1 to i32
    %c0_i32_9 = arith.constant 0 : i32
    %11 = arith.cmpi ne, %10, %c0_i32_9 : i32
    scf.if %11 {
      %c0_10 = arith.constant 0 : index
      %c0_11 = arith.constant 0 : index
      %12 = vector.load %arg6[%c0_10, %c0_11] : memref<8x256xf32, #tpu.memory_space<vmem>>, vector<8x256xf32>
      %c0_12 = arith.constant 0 : index
      %c0_13 = arith.constant 0 : index
      %13 = vector.load %arg4[%c0_12, %c0_13] : memref<1x256xf32, #tpu.memory_space<vmem>>, vector<1x256xf32>
      %14 = vector.broadcast %13 : vector<1x256xf32> to vector<8x256xf32>
      %15 = arith.addf %12, %14 : vector<8x256xf32>
      %16 = vector.extract_strided_slice %15 {offsets = [0, 0], sizes = [8, 128], strides = [1, 1]} : vector<8x256xf32> to vector<8x128xf32>
      %cst_14 = arith.constant dense<0xFF800000> : vector<8xf32>
      %17 = vector.multi_reduction <maximumf>, %16, %cst_14 [1] : vector<8x128xf32> to vector<8xf32>
      %18 = vector.shape_cast %17 : vector<8xf32> to vector<8x1xf32>
      %19 = vector.broadcast %18 : vector<8x1xf32> to vector<8x128xf32>
      %20 = arith.subf %16, %19 : vector<8x128xf32>
      %21 = math.exp %20 : vector<8x128xf32>
      %cst_15 = arith.constant dense<0.000000e+00> : vector<8xf32>
      %22 = vector.multi_reduction <add>, %21, %cst_15 [1] : vector<8x128xf32> to vector<8xf32>
      %23 = vector.shape_cast %22 : vector<8xf32> to vector<8x1xf32>
      %24 = math.log %23 : vector<8x1xf32>
      %25 = arith.addf %24, %18 : vector<8x1xf32>
      %26 = vector.broadcast %25 : vector<8x1xf32> to vector<8x128xf32>
      %27 = arith.subf %16, %26 : vector<8x128xf32>
      %c0_16 = arith.constant 0 : index
      %c0_17 = arith.constant 0 : index
      %28 = vector.load %arg5[%c0_16, %c0_17] : memref<8x256xf32, #tpu.memory_space<vmem>>, vector<8x128xf32>
      tpu.vector_store %arg5[%c0_16, %c0_17], %27 {strides = array<i32>} : memref<8x256xf32, #tpu.memory_space<vmem>>, vector<8x128xf32>,
      %29 = vector.extract_strided_slice %15 {offsets = [0, 128], sizes = [8, 128], strides = [1, 1]} : vector<8x256xf32> to vector<8x128xf32>
      %cst_18 = arith.constant dense<0xFF800000> : vector<8xf32>
      %30 = vector.multi_reduction <maximumf>, %29, %cst_18 [1] : vector<8x128xf32> to vector<8xf32>
      %31 = vector.shape_cast %30 : vector<8xf32> to vector<8x1xf32>
      %32 = vector.broadcast %31 : vector<8x1xf32> to vector<8x128xf32>
      %33 = arith.subf %29, %32 : vector<8x128xf32>
      %34 = math.exp %33 : vector<8x128xf32>
      %cst_19 = arith.constant dense<0.000000e+00> : vector<8xf32>
      %35 = vector.multi_reduction <add>, %34, %cst_19 [1] : vector<8x128xf32> to vector<8xf32>
      %36 = vector.shape_cast %35 : vector<8xf32> to vector<8x1xf32>
      %37 = math.log %36 : vector<8x1xf32>
      %38 = arith.addf %37, %31 : vector<8x1xf32>
      %39 = vector.broadcast %38 : vector<8x1xf32> to vector<8x128xf32>
      %40 = arith.subf %29, %39 : vector<8x128xf32>
      %c0_20 = arith.constant 0 : index
      %c128 = arith.constant 128 : index
      %41 = vector.load %arg5[%c0_20, %c128] : memref<8x256xf32, #tpu.memory_space<vmem>>, vector<8x128xf32>
      tpu.vector_store %arg5[%c0_20, %c128], %40 {strides = array<i32>} : memref<8x256xf32, #tpu.memory_space<vmem>>, vector<8x128xf32>,
    } else {
    }
    return
  }
  func.func @transform_0(%arg0: i32, %arg1: i32) -> (i32, i32) {
    %c0_i32 = arith.constant 0 : i32
    return %arg0, %arg1 : i32, i32
  }
  func.func @transform_1(%arg0: i32, %arg1: i32) -> (i32, i32) {
    %c0_i32 = arith.constant 0 : i32
    %c0_i32_0 = arith.constant 0 : i32
    return %arg1, %c0_i32 : i32, i32
  }
  func.func @transform_2(%arg0: i32, %arg1: i32) -> (i32, i32) {
    %c0_i32 = arith.constant 0 : i32
    %c0_i32_0 = arith.constant 0 : i32
    %c0_i32_1 = arith.constant 0 : i32
    return %c0_i32, %c0_i32_0 : i32, i32
  }
  func.func @transform_3(%arg0: i32, %arg1: i32) -> (i32, i32) {
    %c0_i32 = arith.constant 0 : i32
    %c0_i32_0 = arith.constant 0 : i32
    return %arg0, %c0_i32 : i32, i32
  }
}

</mosaic_0001>

<bundles_post_ra>
// kernel: tpu_custom_call.1
= control target key start
LH: loop header
LB: loop body
LE: loop exit
PB: predicated region body
PF: predicated region fallthrough
CT: control target
= control target key end

     0   :  { %8 = vsyncpa [#allocation4], 0  ;;  %s1540_s0 = inlined_call_operand.hbm [shape: bf16[8,1024], index: 0, kind: input, shape index: {}]   ;;  %s1541_s1 = inlined_call_operand.hbm [shape: bf16[1024,256], index: 1, kind: input, shape index: {}]   ;;  %s1542_s2 = inlined_call_operand.vmem [shape: f32[1,256], index: 2, kind: input, shape index: {}]   ;;  %s1543_s3 = inlined_call_operand.hbm [shape: f32[8,256], index: 3, kind: output, shape index: {}]  }
   0x1   :  { %9 = vsyncpa [#allocation7], 0 }
   0x2   :  { %10 = vsyncpa [#allocation5], 0  ;;  %s1491_s12 = smov [#allocation3]   ;;  %s1492_s14 = smov [#allocation6]  }
   0x3   :  { %s17_s13 = sshll.u32 %s1491_s12, 4  ;;  %s26_s15 = sshll.u32 %s1492_s14, 4  ;;  %s18_s13 = int_to_ptr.vmem [resolvable:$true] %s17_s13  ;;  %s27_s15 = int_to_ptr.vmem [resolvable:$true] %s26_s15 }
   0x4   :  { %s1433_s16 = scalar_lea.vmem %s18_s13, 512  ;;  %p1438_p1 = scmp.lt.s32.totalorder %s18_s13, %s18_s13 }
   0x5   :  { %p1434_p0 = scmp.ne.s32.totalorder %s18_s13, %s1433_s16  ;;  %p1439_p2 = scmp.lt.s32.totalorder %s1433_s16, %s1433_s16 }
   0x7   :  { %p1440_p3 = por %p1439_p2, %p1438_p1 }
   0x9   :  { %p1441_p4 = pnand %p1440_p3, %p1434_p0 }
   0xb   :  { %1444 = shalt.err (!%p1441_p4)
}
   0xc   :  { %20 = dma.hbm_to_vmem [thread:$0]  %s1540_s0, 512, %s18_s13, [#allocation4]  }
   0xd   :  { %s1453_s19 = scalar_lea.vmem %s27_s15, 16384  ;;  %p1458_p6 = scmp.lt.s32.totalorder %s27_s15, %s27_s15 }
   0xe   :  { %p1454_p5 = scmp.ne.s32.totalorder %s27_s15, %s1453_s19  ;;  %p1459_p7 = scmp.lt.s32.totalorder %s1453_s19, %s1453_s19 }
  0x10   :  { %p1460_p8 = por %p1459_p7, %p1458_p6 }
  0x12   :  { %p1461_p9 = pnand %p1460_p8, %p1454_p5 }
  0x14   :  { %1464 = shalt.err (!%p1461_p9)
}
  0x15   :  { %s1493_s20 = smov 128   ;;  %s1494_s21 = smov 8  }
  0x16   :  { %32 = dma.hbm_to_vmem [thread:$0]  %s1541_s1, 16384, %s27_s15, [#allocation7], %s1493_s20, %s1493_s20, %s1494_s21  }
  0x17   :  { %1485 = dma.done.wait [#allocation4], 512  }
  0x18   :  { %1486 = vsyncadd [#allocation4], 4294966784 }
  0x19   :  { %1487 = dma.done.wait [#allocation7], 16384  }
  0x1a   :  { %1488 = vsyncadd [#allocation7], 4294950912  ;;  %v1217_v0 = vld [vmem:[#allocation6 + $0x74] ss:$8 sps:$4 sm:$0xff]   ;;  %v1221_v2 = vld [vmem:[#allocation6 + $0x70] ss:$8 sps:$4 sm:$0xff]  }
  0x1b   :  { %v1219_v1 = vld [vmem:[#allocation6 + $0x174] ss:$8 sps:$4 sm:$0xff]   ;;  %849 = vmatprep.subr.bf16.mxu0 %v1217_v0  ;;  %v1222_v3 = vld [vmem:[#allocation6 + $0x170] ss:$8 sps:$4 sm:$0xff]   ;;  %v1223_v4 = vld [vmem:[#allocation6 + $0x64] ss:$8 sps:$4 sm:$0xff]  }
  0x1c   :  { %890 = vmatprep.subr.bf16.mxu1 %v1219_v1  ;;  %850 = vmatpush1.bf16.msra.mxu0 %v1221_v2  ;;  %v1225_v5 = vld [vmem:[#allocation6 + $0x164] ss:$8 sps:$4 sm:$0xff]   ;;  %v1227_v6 = vld [vmem:[#allocation6 + $0x60] ss:$8 sps:$4 sm:$0xff]   ;;  %v1229_v8 = vld [vmem:[#allocation6 + $0x54] ss:$8 sps:$4 sm:$0xff]  }
  0x1d   :  { %891 = vmatpush1.bf16.msra.mxu1 %v1222_v3  ;;  %851 = vmatprep.subr.bf16.mxu0 %v1223_v4  ;;  %v1228_v7 = vld [vmem:[#allocation6 + $0x160] ss:$8 sps:$4 sm:$0xff]   ;;  %v1231_v9 = vld [vmem:[#allocation6 + $0x154] ss:$8 sps:$4 sm:$0xff]   ;;  %v1233_v10 = vld [vmem:[#allocation6 + $0x50] ss:$8 sps:$4 sm:$0xff]  }
  0x1e   :  { %892 = vmatprep.subr.bf16.mxu1 %v1225_v5  ;;  %v1234_v11 = vld [vmem:[#allocation6 + $0x150] ss:$8 sps:$4 sm:$0xff]   ;;  %v1235_v12 = vld [vmem:[#allocation6 + $0x44] ss:$8 sps:$4 sm:$0xff]   ;;  %v1239_v14 = vld [vmem:[#allocation6 + $0x40] ss:$8 sps:$4 sm:$0xff]  }
  0x1f   :  { %v1237_v13 = vld [vmem:[#allocation6 + $0x144] ss:$8 sps:$4 sm:$0xff]   ;;  %v1240_v15 = vld [vmem:[#allocation6 + $0x140] ss:$8 sps:$4 sm:$0xff]   ;;  %v1241_v16 = vld [vmem:[#allocation6 + $0x34] ss:$8 sps:$4 sm:$0xff]  }
  0x20   :  { %852 = vmatpush1.bf16.msra.mxu0 %v1227_v6  ;;  %v1243_v17 = vld [vmem:[#allocation6 + $0x134] ss:$8 sps:$4 sm:$0xff]   ;;  %v1245_v18 = vld [vmem:[#allocation6 + $0x30] ss:$8 sps:$4 sm:$0xff]   ;;  %v1247_v20 = vld [vmem:[#allocation6 + $0x24] ss:$8 sps:$4 sm:$0xff]  }
  0x21   :  { %893 = vmatpush1.bf16.msra.mxu1 %v1228_v7  ;;  %853 = vmatprep.subr.bf16.mxu0 %v1229_v8  ;;  %v1246_v19 = vld [vmem:[#allocation6 + $0x130] ss:$8 sps:$4 sm:$0xff]   ;;  %v1249_v21 = vld [vmem:[#allocation6 + $0x124] ss:$8 sps:$4 sm:$0xff]   ;;  %v1251_v22 = vld [vmem:[#allocation6 + $0x20] ss:$8 sps:$4 sm:$0xff]  }
  0x22   :  { %894 = vmatprep.subr.bf16.mxu1 %v1231_v9  ;;  %v1252_v23 = vld [vmem:[#allocation6 + $0x120] ss:$8 sps:$4 sm:$0xff]   ;;  %v1253_v24 = vld [vmem:[#allocation6 + $0x14] ss:$8 sps:$4 sm:$0xff]   ;;  %v1257_v26 = vld [vmem:[#allocation6 + $0x10] ss:$8 sps:$4 sm:$0xff]  }
  0x23   :  { %v1255_v25 = vld [vmem:[#allocation6 + $0x114] ss:$8 sps:$4 sm:$0xff]   ;;  %v1258_v27 = vld [vmem:[#allocation6 + $0x110] ss:$8 sps:$4 sm:$0xff]   ;;  %v1259_v28 = vld [vmem:[#allocation6 + $0x4] ss:$8 sps:$4 sm:$0xff]  }
  0x24   :  { %854 = vmatpush1.bf16.msra.mxu0 %v1233_v10  ;;  %v1261_v29 = vld [vmem:[#allocation6 + $0x104] ss:$8 sps:$4 sm:$0xff]   ;;  %v1263_v30 = vld [vmem:[#allocation6] ss:$8 sps:$4 sm:$0xff]   ;;  %v1265_v32 = vld [vmem:[#allocation6 + $0xf4] ss:$8 sps:$4 sm:$0xff]  }
  0x25   :  { %895 = vmatpush1.bf16.msra.mxu1 %v1234_v11  ;;  %855 = vmatprep.subr.bf16.mxu0 %v1235_v12  ;;  %v1264_v31 = vld [vmem:[#allocation6 + $0x100] ss:$8 sps:$4 sm:$0xff]   ;;  %v1267_v33 = vld [vmem:[#allocation6 + $0x1f4] ss:$8 sps:$4 sm:$0xff]   ;;  %v1269_v34 = vld [vmem:[#allocation6 + $0xf0] ss:$8 sps:$4 sm:$0xff]  }
  0x26   :  { %896 = vmatprep.subr.bf16.mxu1 %v1237_v13  ;;  %v1270_v35 = vld [vmem:[#allocation6 + $0x1f0] ss:$8 sps:$4 sm:$0xff]   ;;  %v1271_v36 = vld [vmem:[#allocation6 + $0xe4] ss:$8 sps:$4 sm:$0xff]   ;;  %v1275_v38 = vld [vmem:[#allocation6 + $0xe0] ss:$8 sps:$4 sm:$0xff]  }
  0x27   :  { %v1273_v37 = vld [vmem:[#allocation6 + $0x1e4] ss:$8 sps:$4 sm:$0xff]   ;;  %v1276_v39 = vld [vmem:[#allocation6 + $0x1e0] ss:$8 sps:$4 sm:$0xff]   ;;  %v1277_v40 = vld [vmem:[#allocation6 + $0xd4] ss:$8 sps:$4 sm:$0xff]  }
  0x28   :  { %856 = vmatpush1.bf16.msra.mxu0 %v1239_v14  ;;  %v1279_v41 = vld [vmem:[#allocation6 + $0x1d4] ss:$8 sps:$4 sm:$0xff]   ;;  %v1281_v42 = vld [vmem:[#allocation6 + $0xd0] ss:$8 sps:$4 sm:$0xff]   ;;  %v1283_v44 = vld [vmem:[#allocation6 + $0xc4] ss:$8 sps:$4 sm:$0xff]  }
  0x29   :  { %897 = vmatpush1.bf16.msra.mxu1 %v1240_v15  ;;  %857 = vmatprep.subr.bf16.mxu0 %v1241_v16  ;;  %v1282_v43 = vld [vmem:[#allocation6 + $0x1d0] ss:$8 sps:$4 sm:$0xff]   ;;  %v1285_v45 = vld [vmem:[#allocation6 + $0x1c4] ss:$8 sps:$4 sm:$0xff]   ;;  %v1287_v49 = vld [vmem:[#allocation6 + $0xc0] ss:$8 sps:$4 sm:$0xff]  }
  0x2a   :  { %898 = vmatprep.subr.bf16.mxu1 %v1243_v17  ;;  %v49_v46 = vld [vmem:[#allocation3] sm:$0xff]  ;;  %v50_v48 = vld [vmem:[#allocation3 + $0x8] sm:$0xff]  ;;  %v1289_v52 = vld [vmem:[#allocation6 + $0xb4] ss:$8 sps:$4 sm:$0xff]  }
  0x2b   :  { %v1077_v47 = vcombine.high %v49_v46, %v49_v46  ;;  %v1288_v50 = vld [vmem:[#allocation6 + $0x1c0] ss:$8 sps:$4 sm:$0xff]   ;;  %v1079_v51 = vcombine.high %v50_v48, %v50_v48  ;;  %v1291_v53 = vld [vmem:[#allocation6 + $0x1b4] ss:$8 sps:$4 sm:$0xff]   ;;  %v1293_v54 = vld [vmem:[#allocation6 + $0xb0] ss:$8 sps:$4 sm:$0xff]   ;;  %v1076_v6 = vcombine.low %v49_v46, %v49_v46  ;;  %v1078_v7 = vcombine.low %v50_v48, %v50_v48 }
  0x2c   :  { %858 = vmatpush1.bf16.msra.mxu0 %v1245_v18  ;;  %v1294_v55 = vld [vmem:[#allocation6 + $0x1b0] ss:$8 sps:$4 sm:$0xff]   ;;  %v1295_v56 = vld [vmem:[#allocation6 + $0xa4] ss:$8 sps:$4 sm:$0xff]   ;;  %v1299_v58 = vld [vmem:[#allocation6 + $0xa0] ss:$8 sps:$4 sm:$0xff]  }
  0x2d   :  { %899 = vmatpush1.bf16.msra.mxu1 %v1246_v19  ;;  %859 = vmatprep.subr.bf16.mxu0 %v1247_v20  ;;  %v1297_v57 = vld [vmem:[#allocation6 + $0x1a4] ss:$8 sps:$4 sm:$0xff]   ;;  %v1300_v59 = vld [vmem:[#allocation6 + $0x1a0] ss:$8 sps:$4 sm:$0xff]   ;;  %v1301_v60 = vld [vmem:[#allocation6 + $0x94] ss:$8 sps:$4 sm:$0xff]  }
  0x2e   :  { %900 = vmatprep.subr.bf16.mxu1 %v1249_v21  ;;  %881 = vmatprep.mubr.bf16.mxu0 %v1077_v47  ;;  %v1303_v61 = vld [vmem:[#allocation6 + $0x194] ss:$8 sps:$4 sm:$0xff]   ;;  %v1305_v62 = vld [vmem:[#allocation6 + $0x90] ss:$8 sps:$4 sm:$0xff]   ;;  %v1307_v0 = vld [vmem:[#allocation6 + $0x84] ss:$8 sps:$4 sm:$0xff]  }
  0x2f   :  { %922 = vmatprep.mubr.bf16.mxu1 %v1079_v51  ;;  %v1306_v63 = vld [vmem:[#allocation6 + $0x190] ss:$8 sps:$4 sm:$0xff]   ;;  %v1309_v1 = vld [vmem:[#allocation6 + $0x184] ss:$8 sps:$4 sm:$0xff]   ;;  %v1311_v2 = vld [vmem:[#allocation6 + $0x80] ss:$8 sps:$4 sm:$0xff]  }
  0x30   :  { %860 = vmatpush1.bf16.msra.mxu0 %v1251_v22  ;;  %v1312_v3 = vld [vmem:[#allocation6 + $0x180] ss:$8 sps:$4 sm:$0xff]   ;;  %v1319_v4 = vld [vmem:[#allocation6 + $0x274] ss:$8 sps:$4 sm:$0xff]   ;;  %v1317_v8 = vld [vmem:[#allocation6 + $0x270] ss:$8 sps:$4 sm:$0xff]  }
  0x31   :  { %901 = vmatpush1.bf16.msra.mxu1 %v1252_v23  ;;  %861 = vmatprep.subr.bf16.mxu0 %v1253_v24  ;;  %v1322_v5 = vld [vmem:[#allocation6 + $0x374] ss:$8 sps:$4 sm:$0xff]   ;;  %v1320_v9 = vld [vmem:[#allocation6 + $0x370] ss:$8 sps:$4 sm:$0xff]   ;;  %v1325_v10 = vld [vmem:[#allocation6 + $0x264] ss:$8 sps:$4 sm:$0xff]  }
  0x32   :  { %902 = vmatprep.subr.bf16.mxu1 %v1255_v25  ;;  %v1328_v11 = vld [vmem:[#allocation6 + $0x364] ss:$8 sps:$4 sm:$0xff]   ;;  %v1323_v12 = vld [vmem:[#allocation6 + $0x260] ss:$8 sps:$4 sm:$0xff]   ;;  %v1331_v14 = vld [vmem:[#allocation6 + $0x254] ss:$8 sps:$4 sm:$0xff]  }
  0x33   :  { %v1326_v13 = vld [vmem:[#allocation6 + $0x360] ss:$8 sps:$4 sm:$0xff]   ;;  %v1334_v15 = vld [vmem:[#allocation6 + $0x354] ss:$8 sps:$4 sm:$0xff]   ;;  %v1329_v16 = vld [vmem:[#allocation6 + $0x250] ss:$8 sps:$4 sm:$0xff]  }
  0x34   :  { %862 = vmatpush1.bf16.msra.mxu0 %v1257_v26  ;;  %v1332_v17 = vld [vmem:[#allocation6 + $0x350] ss:$8 sps:$4 sm:$0xff]   ;;  %v1337_v18 = vld [vmem:[#allocation6 + $0x244] ss:$8 sps:$4 sm:$0xff]   ;;  %v1335_v20 = vld [vmem:[#allocation6 + $0x240] ss:$8 sps:$4 sm:$0xff]  }
  0x35   :  { %903 = vmatpush1.bf16.msra.mxu1 %v1258_v27  ;;  %863 = vmatprep.subr.bf16.mxu0 %v1259_v28  ;;  %v1340_v19 = vld [vmem:[#allocation6 + $0x344] ss:$8 sps:$4 sm:$0xff]   ;;  %v1338_v21 = vld [vmem:[#allocation6 + $0x340] ss:$8 sps:$4 sm:$0xff]   ;;  %v1343_v22 = vld [vmem:[#allocation6 + $0x234] ss:$8 sps:$4 sm:$0xff]  }
  0x36   :  { %904 = vmatprep.subr.bf16.mxu1 %v1261_v29  ;;  %v1346_v23 = vld [vmem:[#allocation6 + $0x334] ss:$8 sps:$4 sm:$0xff]   ;;  %v1341_v24 = vld [vmem:[#allocation6 + $0x230] ss:$8 sps:$4 sm:$0xff]   ;;  %v1349_v26 = vld [vmem:[#allocation6 + $0x224] ss:$8 sps:$4 sm:$0xff]  }
  0x37   :  { %v1344_v25 = vld [vmem:[#allocation6 + $0x330] ss:$8 sps:$4 sm:$0xff]   ;;  %v1352_v27 = vld [vmem:[#allocation6 + $0x324] ss:$8 sps:$4 sm:$0xff]   ;;  %v1347_v28 = vld [vmem:[#allocation6 + $0x220] ss:$8 sps:$4 sm:$0xff]  }
  0x38   :  { %864 = vmatpush1.bf16.msra.mxu0 %v1263_v30  ;;  %v1350_v29 = vld [vmem:[#allocation6 + $0x320] ss:$8 sps:$4 sm:$0xff]   ;;  %v1355_v30 = vld [vmem:[#allocation6 + $0x214] ss:$8 sps:$4 sm:$0xff]   ;;  %v1373_v46 = vld [vmem:[#allocation6 + $0x2e4] ss:$8 sps:$4 sm:$0xff]  }
  0x39   :  { %905 = vmatpush1.bf16.msra.mxu1 %v1264_v31  ;;  %865 = vmatprep.subr.bf16.mxu0 %v1265_v32  ;;  %v1358_v31 = vld [vmem:[#allocation6 + $0x314] ss:$8 sps:$4 sm:$0xff]   ;;  %v1376_v47 = vld [vmem:[#allocation6 + $0x3e4] ss:$8 sps:$4 sm:$0xff]   ;;  %v1371_v48 = vld [vmem:[#allocation6 + $0x2e0] ss:$8 sps:$4 sm:$0xff]  }
  0x3a   :  { %906 = vmatprep.subr.bf16.mxu1 %v1267_v33  ;;  %v1522_v32 = vld [vmem:[#allocation3 + $0x10] sm:$0xff]  ;;  %v1524_v33 = vld [vmem:[#allocation3 + $0x18] sm:$0xff] }
  0x3b   :  { %v1382_v51 = vld [vmem:[#allocation6 + $0x3d4] ss:$8 sps:$4 sm:$0xff]  }
  0x3c   :  { %866 = vmatpush2.bf16.msra.mxu0 %v1269_v34  ;;  %v1081_v34 = vcombine.high %v1522_v32, %v1522_v32 }
  0x3d   :  { %907 = vmatpush2.bf16.msra.mxu1 %v1270_v35  ;;  %867 = vmatprep.subr.bf16.mxu0 %v1271_v36  ;;  %v1083_v35 = vcombine.high %v1524_v33, %v1524_v33  ;;  %v1353_v36 = vld [vmem:[#allocation6 + $0x210] ss:$8 sps:$4 sm:$0xff]  }
  0x3e   :  { %908 = vmatprep.subr.bf16.mxu1 %v1273_v37  ;;  %v1356_v37 = vld [vmem:[#allocation6 + $0x310] ss:$8 sps:$4 sm:$0xff]  }
  0x40   :  { %868 = vmatpush2.bf16.msra.mxu0 %v1275_v38  ;;  %v1361_v38 = vld [vmem:[#allocation6 + $0x204] ss:$8 sps:$4 sm:$0xff]  }
  0x41   :  { %909 = vmatpush2.bf16.msra.mxu1 %v1276_v39  ;;  %869 = vmatprep.subr.bf16.mxu0 %v1277_v40  ;;  %v1364_v39 = vld [vmem:[#allocation6 + $0x304] ss:$8 sps:$4 sm:$0xff]   ;;  %v1359_v40 = vld [vmem:[#allocation6 + $0x200] ss:$8 sps:$4 sm:$0xff]  }
  0x42   :  { %910 = vmatprep.subr.bf16.mxu1 %v1279_v41  ;;  %v1362_v41 = vld [vmem:[#allocation6 + $0x300] ss:$8 sps:$4 sm:$0xff]  }
  0x44   :  { %870 = vmatpush2.bf16.msra.mxu0 %v1281_v42  ;;  %v1367_v42 = vld [vmem:[#allocation6 + $0x2f4] ss:$8 sps:$4 sm:$0xff]  }
  0x45   :  { %911 = vmatpush2.bf16.msra.mxu1 %v1282_v43  ;;  %871 = vmatprep.subr.bf16.mxu0 %v1283_v44  ;;  %v1370_v43 = vld [vmem:[#allocation6 + $0x3f4] ss:$8 sps:$4 sm:$0xff]   ;;  %v1365_v44 = vld [vmem:[#allocation6 + $0x2f0] ss:$8 sps:$4 sm:$0xff]  }
  0x46   :  { %912 = vmatprep.subr.bf16.mxu1 %v1285_v45  ;;  %v1368_v45 = vld [vmem:[#allocation6 + $0x3f0] ss:$8 sps:$4 sm:$0xff]  }
  0x48   :  { %872 = vmatpush2.bf16.msra.mxu0 %v1287_v49  ;;  %v1374_v49 = vld [vmem:[#allocation6 + $0x3e0] ss:$8 sps:$4 sm:$0xff]  }
  0x49   :  { %913 = vmatpush2.bf16.msra.mxu1 %v1288_v50  ;;  %873 = vmatprep.subr.bf16.mxu0 %v1289_v52  ;;  %v1379_v50 = vld [vmem:[#allocation6 + $0x2d4] ss:$8 sps:$4 sm:$0xff]   ;;  %v1377_v52 = vld [vmem:[#allocation6 + $0x2d0] ss:$8 sps:$4 sm:$0xff]  }
  0x4a   :  { %914 = vmatprep.subr.bf16.mxu1 %v1291_v53  ;;  %v1380_v53 = vld [vmem:[#allocation6 + $0x3d0] ss:$8 sps:$4 sm:$0xff]  }
  0x4c   :  { %874 = vmatpush2.bf16.msra.mxu0 %v1293_v54  ;;  %v1385_v54 = vld [vmem:[#allocation6 + $0x2c4] ss:$8 sps:$4 sm:$0xff]  }
  0x4d   :  { %915 = vmatpush2.bf16.msra.mxu1 %v1294_v55  ;;  %875 = vmatprep.subr.bf16.mxu0 %v1295_v56  ;;  %v1388_v55 = vld [vmem:[#allocation6 + $0x3c4] ss:$8 sps:$4 sm:$0xff]   ;;  %v1383_v56 = vld [vmem:[#allocation6 + $0x2c0] ss:$8 sps:$4 sm:$0xff]  }
  0x4e   :  { %916 = vmatprep.subr.bf16.mxu1 %v1297_v57  ;;  %v1386_v57 = vld [vmem:[#allocation6 + $0x3c0] ss:$8 sps:$4 sm:$0xff]  }
  0x50   :  { %876 = vmatpush2.bf16.msra.mxu0 %v1299_v58  ;;  %v1391_v58 = vld [vmem:[#allocation6 + $0x2b4] ss:$8 sps:$4 sm:$0xff]  }
  0x51   :  { %917 = vmatpush2.bf16.msra.mxu1 %v1300_v59  ;;  %877 = vmatprep.subr.bf16.mxu0 %v1301_v60  ;;  %v1394_v59 = vld [vmem:[#allocation6 + $0x3b4] ss:$8 sps:$4 sm:$0xff]   ;;  %v1389_v60 = vld [vmem:[#allocation6 + $0x2b0] ss:$8 sps:$4 sm:$0xff]  }
  0x52   :  { %918 = vmatprep.subr.bf16.mxu1 %v1303_v61  ;;  %v1392_v61 = vld [vmem:[#allocation6 + $0x3b0] ss:$8 sps:$4 sm:$0xff]  }
  0x54   :  { %878 = vmatpush2.bf16.msra.mxu0 %v1305_v62  ;;  %v1397_v62 = vld [vmem:[#allocation6 + $0x2a4] ss:$8 sps:$4 sm:$0xff]  }
  0x55   :  { %919 = vmatpush2.bf16.msra.mxu1 %v1306_v63  ;;  %879 = vmatprep.subr.bf16.mxu0 %v1307_v0  ;;  %v1400_v63 = vld [vmem:[#allocation6 + $0x3a4] ss:$8 sps:$4 sm:$0xff]   ;;  %v1395_v0 = vld [vmem:[#allocation6 + $0x2a0] ss:$8 sps:$4 sm:$0xff]  }
  0x56   :  { %920 = vmatprep.subr.bf16.mxu1 %v1309_v1  ;;  %v1398_v1 = vld [vmem:[#allocation6 + $0x3a0] ss:$8 sps:$4 sm:$0xff]  }
  0x58   :  { %880 = vmatpush2.bf16.msra.mxu0 %v1311_v2  ;;  %v1403_v2 = vld [vmem:[#allocation6 + $0x294] ss:$8 sps:$4 sm:$0xff]  }
  0x59   :  { %921 = vmatpush2.bf16.msra.mxu1 %v1312_v3  ;;  %931 = vmatprep.subr.bf16.mxu0 %v1319_v4  ;;  %v1406_v3 = vld [vmem:[#allocation6 + $0x394] ss:$8 sps:$4 sm:$0xff]   ;;  %v1401_v4 = vld [vmem:[#allocation6 + $0x290] ss:$8 sps:$4 sm:$0xff]  }
  0x5a   :  { %972 = vmatprep.subr.bf16.mxu1 %v1322_v5  ;;  %v1404_v5 = vld [vmem:[#allocation6 + $0x390] ss:$8 sps:$4 sm:$0xff]  }
  0x5b   :  { %882 = vmatmul.mubr.bf16.vlgmr.msra.gmra.mxu0 %v1076_v6  ;;  %v1409_v6 = vld [vmem:[#allocation6 + $0x284] ss:$8 sps:$4 sm:$0xff]  }
  0x5c   :  { %923 = vmatmul.mubr.bf16.vlgmr.msra.gmra.mxu1 %v1078_v7  ;;  %932 = vmatpush1.bf16.msra.mxu0 %v1317_v8  ;;  %v1412_v7 = vld [vmem:[#allocation6 + $0x384] ss:$8 sps:$4 sm:$0xff]   ;;  %v1407_v8 = vld [vmem:[#allocation6 + $0x280] ss:$8 sps:$4 sm:$0xff]  }
  0x5d   :  { %973 = vmatpush1.bf16.msra.mxu1 %v1320_v9  ;;  %933 = vmatprep.subr.bf16.mxu0 %v1325_v10  ;;  %v1410_v9 = vld [vmem:[#allocation6 + $0x380] ss:$8 sps:$4 sm:$0xff]   ;;  %v1080_v10 = vcombine.low %v1522_v32, %v1522_v32 }
  0x5e   :  { %974 = vmatprep.subr.bf16.mxu1 %v1328_v11  ;;  %963 = vmatprep.mubr.bf16.mxu0 %v1081_v34  ;;  %v1082_v11 = vcombine.low %v1524_v33, %v1524_v33 }
  0x5f   :  { %1004 = vmatprep.mubr.bf16.mxu1 %v1083_v35 }
  0x60   :  { %934 = vmatpush1.bf16.msra.mxu0 %v1323_v12 }
  0x61   :  { %975 = vmatpush1.bf16.msra.mxu1 %v1326_v13  ;;  %935 = vmatprep.subr.bf16.mxu0 %v1331_v14 }
  0x62   :  { %976 = vmatprep.subr.bf16.mxu1 %v1334_v15 }
  0x64   :  { %936 = vmatpush1.bf16.msra.mxu0 %v1329_v16 }
  0x65   :  { %977 = vmatpush1.bf16.msra.mxu1 %v1332_v17  ;;  %937 = vmatprep.subr.bf16.mxu0 %v1337_v18 }
  0x66   :  { %978 = vmatprep.subr.bf16.mxu1 %v1340_v19 }
  0x68   :  { %938 = vmatpush1.bf16.msra.mxu0 %v1335_v20 }
  0x69   :  { %979 = vmatpush1.bf16.msra.mxu1 %v1338_v21  ;;  %939 = vmatprep.subr.bf16.mxu0 %v1343_v22  ;;  %v1024_v21 = vlaneseq }
  0x6a   :  { %980 = vmatprep.subr.bf16.mxu1 %v1346_v23 }
  0x6b   :  { %v1025_v22 = vshrl.u32 %v1024_v21, 7 }
  0x6c   :  { %940 = vmatpush1.bf16.msra.mxu0 %v1341_v24  ;;  %v1022_v24 = vld [vmem:[%s1542_s2] sm:$0x3]  ;;  %s1495_s2 = smov [#allocation8]  }
  0x6d   :  { %981 = vmatpush1.bf16.msra.mxu1 %v1344_v25  ;;  %941 = vmatprep.subr.bf16.mxu0 %v1349_v26  ;;  %v1026_v23 = vsub.s32 0, %v1025_v22  ;;  %s1066_s24 = sshll.u32 %s1495_s2, 4  ;;  %s1067_s24 = int_to_ptr.vmem [resolvable:$true] %s1066_s24 }
  0x6e   :  { %982 = vmatprep.subr.bf16.mxu1 %v1352_v27  ;;  %s1465_s25 = scalar_lea.vmem %s1067_s24, 256  ;;  %p1470_p11 = scmp.lt.s32.totalorder %s1067_s24, %s1067_s24 }
  0x6f   :  { %p1466_p10 = scmp.ne.s32.totalorder %s1067_s24, %s1465_s25  ;;  %p1471_p12 = scmp.lt.s32.totalorder %s1465_s25, %s1465_s25 }
  0x70   :  { %942 = vmatpush1.bf16.msra.mxu0 %v1347_v28 }
  0x71   :  { %983 = vmatpush1.bf16.msra.mxu1 %v1350_v29  ;;  %943 = vmatprep.subr.bf16.mxu0 %v1355_v30  ;;  %v1027_v29 = vrot.slane %v1022_v24, %v1026_v23  ;;  %v1030_v30 = vsub.s32 1, %v1025_v22  ;;  %p1472_p13 = por %p1471_p12, %p1470_p11 }
  0x72   :  { %984 = vmatprep.subr.bf16.mxu1 %v1358_v31 }
  0x73   :  { %p1473_p0 = pnand %p1472_p13, %p1466_p10 }
  0x74   :  { %944 = vmatpush1.bf16.msra.mxu0 %v1353_v36 }
  0x75   :  { %985 = vmatpush1.bf16.msra.mxu1 %v1356_v37  ;;  %945 = vmatprep.subr.bf16.mxu0 %v1361_v38 }
  0x76   :  { %986 = vmatprep.subr.bf16.mxu1 %v1364_v39  ;;  %v1031_v39 = vrot.slane %v1022_v24, %v1030_v30 }
  0x78   :  { %946 = vmatpush1.bf16.msra.mxu0 %v1359_v40 }
  0x79   :  { %987 = vmatpush1.bf16.msra.mxu1 %v1362_v41  ;;  %947 = vmatprep.subr.bf16.mxu0 %v1367_v42 }
  0x7a   :  { %988 = vmatprep.subr.bf16.mxu1 %v1370_v43 }
  0x7c   :  { %948 = vmatpush2.bf16.msra.mxu0 %v1365_v44 }
  0x7d   :  { %989 = vmatpush2.bf16.msra.mxu1 %v1368_v45  ;;  %949 = vmatprep.subr.bf16.mxu0 %v1373_v46 }
  0x7e   :  { %990 = vmatprep.subr.bf16.mxu1 %v1376_v47 }
  0x80   :  { %950 = vmatpush2.bf16.msra.mxu0 %v1371_v48 }
  0x81   :  { %991 = vmatpush2.bf16.msra.mxu1 %v1374_v49  ;;  %951 = vmatprep.subr.bf16.mxu0 %v1379_v50 }
  0x82   :  { %992 = vmatprep.subr.bf16.mxu1 %v1382_v51 }
  0x84   :  { %952 = vmatpush2.bf16.msra.mxu0 %v1377_v52 }
  0x85   :  { %993 = vmatpush2.bf16.msra.mxu1 %v1380_v53  ;;  %953 = vmatprep.subr.bf16.mxu0 %v1385_v54 }
  0x86   :  { %994 = vmatprep.subr.bf16.mxu1 %v1388_v55 }
  0x88   :  { %954 = vmatpush2.bf16.msra.mxu0 %v1383_v56 }
  0x89   :  { %995 = vmatpush2.bf16.msra.mxu1 %v1386_v57  ;;  %955 = vmatprep.subr.bf16.mxu0 %v1391_v58 }
  0x8a   :  { %996 = vmatprep.subr.bf16.mxu1 %v1394_v59 }
  0x8c   :  { %956 = vmatpush2.bf16.msra.mxu0 %v1389_v60 }
  0x8d   :  { %997 = vmatpush2.bf16.msra.mxu1 %v1392_v61  ;;  %957 = vmatprep.subr.bf16.mxu0 %v1397_v62 }
  0x8e   :  { %998 = vmatprep.subr.bf16.mxu1 %v1400_v63 }
  0x90   :  { %958 = vmatpush2.bf16.msra.mxu0 %v1395_v0 }
  0x91   :  { %999 = vmatpush2.bf16.msra.mxu1 %v1398_v1  ;;  %959 = vmatprep.subr.bf16.mxu0 %v1403_v2 }
  0x92   :  { %1000 = vmatprep.subr.bf16.mxu1 %v1406_v3 }
  0x94   :  { %960 = vmatpush2.bf16.msra.mxu0 %v1401_v4 }
  0x95   :  { %1001 = vmatpush2.bf16.msra.mxu1 %v1404_v5  ;;  %961 = vmatprep.subr.bf16.mxu0 %v1409_v6 }
  0x96   :  { %1002 = vmatprep.subr.bf16.mxu1 %v1412_v7 }
  0x98   :  { %962 = vmatpush2.bf16.msra.mxu0 %v1407_v8 }
  0x99   :  { %1003 = vmatpush2.bf16.msra.mxu1 %v1410_v9 }
  0x9b   :  { %964 = vmatmul.mubr.bf16.vlgmr.msra.gmra.mxu0 %v1080_v10 }
  0x9c   :  { %1005 = vmatmul.mubr.bf16.vlgmr.msra.gmra.mxu1 %v1082_v11 }
 0x11b   :  { %v883_v12 = vpop.f32.mrf.mxu0 }
 0x11c   :  { %v924_v13 = vpop.f32.mrf.mxu1 }
 0x11d   :  { %v885_v14 = vpop.f32.mrf.mxu0  ;;  %v925_v25 = vadd.f32 %v924_v13, %v883_v12 }
 0x11e   :  { %v926_v15 = vpop.f32.mrf.mxu1 }
 0x11f   :  { %v927_v16 = vadd.f32 %v926_v15, %v885_v14  ;;  %v887_v17 = vpop.f32.mrf.mxu0 }
 0x120   :  { %v928_v18 = vpop.f32.mrf.mxu1 }
 0x121   :  { %v888_v19 = vpop.f32.mrf.mxu0 }
 0x122   :  { %v929_v20 = vpop.f32.mrf.mxu1 }
 0x15b   :  { %v965_v26 = vpop.f32.mrf.mxu0 }
 0x15c   :  { %v1006_v27 = vpop.f32.mrf.mxu1  ;;  %v966_v28 = vadd.f32 %v965_v26, %v925_v25 }
 0x15d   :  { %v967_v31 = vpop.f32.mrf.mxu0 }
 0x15e   :  { %v1008_v32 = vpop.f32.mrf.mxu1  ;;  %v1007_v33 = vadd.f32 %v1006_v27, %v966_v28  ;;  %v968_v34 = vadd.f32 %v967_v31, %v927_v16 }
 0x15f   :  { %v969_v35 = vpop.f32.mrf.mxu0 }
 0x160   :  { %v1010_v36 = vpop.f32.mrf.mxu1  ;;  %v1034_v37 = vadd.f32 %v1027_v29, %v1007_v33  ;;  %v1009_v38 = vadd.f32 %v1008_v32, %v968_v34 }
 0x161   :  { %v970_v40 = vpop.f32.mrf.mxu0 }
 0x162   :  { %v1011_v41 = vpop.f32.mrf.mxu1  ;;  %1036 = vmax.xlane.f32.xlu0 %v1034_v37  ;;  %v1035_v42 = vadd.f32 %v1031_v39, %v1009_v38 }
 0x166   :  { %1048 = vmax.xlane.f32.xlu0 %v1035_v42 }
 0x1eb   :  { %v1037_v43 = vpop.xlane.xlu0 %1036 }
 0x1ec   :  { %v1038_v44 = vsub.f32 %v1034_v37, %v1037_v43 }
 0x1ee   :  { %v1039_v45 = vmul.f32 1.442695, %v1038_v44 }
 0x1ef   :  { %v1049_v46 = vpop.xlane.xlu0 %1048 }
 0x1f0   :  { %1417 = vpow2.f32 %v1039_v45  ;;  %v1050_v47 = vsub.f32 %v1035_v42, %v1049_v46 }
 0x1f2   :  { %v1051_v48 = vmul.f32 1.442695, %v1050_v47 }
 0x1f4   :  { %1419 = vpow2.f32 %v1051_v48 }
 0x1fd   :  { %v1418_v49 = vpop.eup %1417 }
 0x1fe   :  { %1041 = vadd.xlane.f32.xlu1 %v1418_v49 }
 0x201   :  { %v1420_v50 = vpop.eup %1419 }
 0x202   :  { %1053 = vadd.xlane.f32.xlu1 %v1420_v50 }
 0x287   :  { %v1042_v51 = vpop.xlane.xlu1 %1041 }
 0x288   :  { %1421 = vlog2.f32 %v1042_v51 }
 0x28b   :  { %v1054_v52 = vpop.xlane.xlu1 %1053 }
 0x28c   :  { %1423 = vlog2.f32 %v1054_v52 }
 0x295   :  { %v1422_v53 = vpop.eup %1421 }
 0x296   :  { %v1044_v54 = vmul.f32 0.6931472, %v1422_v53 }
 0x298   :  { %v1045_v55 = vadd.f32 %v1044_v54, %v1037_v43 }
 0x299   :  { %v1424_v56 = vpop.eup %1423 }
 0x29a   :  { %v1056_v57 = vmul.f32 0.6931472, %v1424_v56  ;;  %v1046_v58 = vsub.f32 %v1034_v37, %v1045_v55 }
 0x29c   :  { %v1057_v59 = vadd.f32 %v1056_v57, %v1049_v46  ;;  %1047 = vst [vmem:[#allocation8] sm:$0xff] %v1046_v58 }
 0x29e   :  { %v1058_v60 = vsub.f32 %v1035_v42, %v1057_v59 }
 0x2a0   :  { %1059 = vst [vmem:[#allocation8 + $0x8] sm:$0xff] %v1058_v60 }
 0x2a1   :  { %1476 = shalt.err (!%p1473_p0)
}
 0x2a2   :  { %1069 = dma.vmem_to_hbm [thread:$0]  %s1067_s24, 256, %s1543_s3, [#allocation5]  }
 0x2a3   :  { %1489 = dma.done.wait [#allocation5], 256  }
 0x2a4   :  { %1490 = vsyncadd [#allocation5], 4294967040 }
 0x2a5   :  { %1073 = vsyncpa [#allocation4], 1 }
 0x2a6   :  { %1074 = vsyncpa [#allocation7], 1 }
 0x2a7   :  { %1075 = vsyncpa [#allocation5], 1 }

</bundles_post_ra>
